<compile_context>
chip_gen: v7x
topology: tpu7x:2x2x1
jax: 0.10.0
libtpu: 0.0.40
codegen_flags: <defaults>
</compile_context>

<pallas_src>
import functools
import math

import jax
import jax.numpy as jnp
from jax.experimental import pallas as pl
from jax.experimental.pallas import tpu as pltpu


def _round_up(x: int, m: int) -> int:
    return (x + m - 1) // m * m


def _pick_chunk(hidden: int) -> int:
    """Smallest chunk T with T*hidden a multiple of 128 lanes and T >= 4 steps."""
    t = 128 // math.gcd(hidden, 128)
    while t < 4:
        t *= 2
    return t


# ---------------------------------------------------------------------------
# Generic fused linear kernel:  y = x @ W^T + b
# Used for (a) the hoisted RNN input projection and (b) the output tag layer.
# ---------------------------------------------------------------------------
def _linear_kernel(x_ref, wt_ref, b_ref, o_ref):
    o_ref[...] = (
        jnp.dot(x_ref[...], wt_ref[...], preferred_element_type=jnp.float32)
        + b_ref[...]
    ).astype(o_ref.dtype)


def linear_pallas(x, w, b, *, row_tile=256):
    """x: (rows, in_f) f32, w: (out_f, in_f), b: (out_f,) -> (rows, out_f) f32."""
    rows, in_f = x.shape
    out_f = w.shape[0]
    tile = min(row_tile, _round_up(rows, 8))
    rows_p = _round_up(rows, tile)
    if rows_p != rows:
        x = jnp.pad(x, ((0, rows_p - rows), (0, 0)))
    wt = jnp.transpose(w, (1, 0))          # (in_f, out_f): tiny wrapper-side prep
    b2d = b.reshape(1, out_f)

    out = pl.pallas_call(
        _linear_kernel,
        out_shape=jax.ShapeDtypeStruct((rows_p, out_f), jnp.float32),
        grid_spec=pltpu.PrefetchScalarGridSpec(
            num_scalar_prefetch=0,
            grid=(rows_p // tile,),
            in_specs=[
                pl.BlockSpec((tile, in_f), lambda r: (r, 0)),
                pl.BlockSpec((in_f, out_f), lambda r: (0, 0)),
                pl.BlockSpec((1, out_f), lambda r: (0, 0)),
            ],
            out_specs=pl.BlockSpec((tile, out_f), lambda r: (r, 0)),
        ),
        compiler_params=pltpu.CompilerParams(
            dimension_semantics=("parallel",),
        ),
    )(x, wt, b2d)
    return out[:rows]


# ---------------------------------------------------------------------------
# Recurrent kernel: processes CHUNK consecutive timesteps per grid step.
#   grid = (batch_shards [parallel], num_chunks [arbitrary / sequential])
# ---------------------------------------------------------------------------
def _rnn_chunk_kernel(xproj_ref, w2t_ref, o_ref, h_ref, *, chunk, hidden, activation):
    """
    xproj_ref : (chunk, batch_shard, hidden)    x@W1^T + b1 + b2, precomputed
    w2t_ref   : (hidden, hidden)                W2^T, resident across the grid
    o_ref     : (1, batch_shard, chunk*hidden)  lane-dense packed hidden states
    h_ref     : (batch_shard, hidden) f32       hidden state carried across chunks
    """
    @pl.when(pl.program_id(1) == 0)
    def _():
        h_ref[...] = jnp.zeros_like(h_ref)

    w2t = w2t_ref[...]
    h = h_ref[...]
    # Statically unrolled inner time loop: only h @ W2^T sits on the serial chain.
    for i in range(chunk):
        z = xproj_ref[i] + jnp.dot(h, w2t, preferred_element_type=jnp.float32)
        if activation == "tanh":
            h = jnp.tanh(z)
        elif activation == "relu":
            h = jnp.maximum(z, 0.0)
        else:
            raise ValueError(f"unsupported activation: {activation}")
        # Pack timestep i into lanes [i*hidden, (i+1)*hidden) so the per-chunk HBM
        # writeback is one dense tile whose lane width is a multiple of 128.
        o_ref[0, :, i * hidden:(i + 1) * hidden] = h.astype(o_ref.dtype)
    h_ref[...] = h


def rnn_recurrence_pallas(xproj_tm, w2, *, chunk, batch_shard, activation="tanh"):
    """xproj_tm: (seq_p, batch_p, hidden) time-major projected inputs (biases folded)."""
    seq_p, batch_p, hidden = xproj_tm.shape
    assert seq_p % chunk == 0 and batch_p % batch_shard == 0
    num_chunks = seq_p // chunk
    n_shards = batch_p // batch_shard
    w2t = jnp.transpose(w2, (1, 0))

    kernel = functools.partial(
        _rnn_chunk_kernel, chunk=chunk, hidden=hidden, activation=activation)

    return pl.pallas_call(
        kernel,
        out_shape=jax.ShapeDtypeStruct(
            (num_chunks, batch_p, chunk * hidden), jnp.float32),
        grid_spec=pltpu.PrefetchScalarGridSpec(
            num_scalar_prefetch=0,
            grid=(n_shards, num_chunks),
            in_specs=[
                pl.BlockSpec((chunk, batch_shard, hidden), lambda s, c: (c, s, 0)),
                # Constant index_map: W2^T stays resident (no per-step re-fetch).
                pl.BlockSpec((hidden, hidden), lambda s, c: (0, 0)),
            ],
            out_specs=pl.BlockSpec(
                (1, batch_shard, chunk * hidden), lambda s, c: (c, s, 0)),
            scratch_shapes=[pltpu.VMEM((batch_shard, hidden), jnp.float32)],
        ),
        compiler_params=pltpu.CompilerParams(
            # Batch shards are independent recurrences (megacore-parallel on v7x);
            # the chunk axis carries the hidden state -> sequential.
            dimension_semantics=("parallel", "arbitrary"),
        ),
    )(xproj_tm, w2t)


# ---------------------------------------------------------------------------
# Full TaggingModel forward.
# ---------------------------------------------------------------------------
def tagging_model_forward(sentences, emb_table, w1, b1, w2, b2, w3, b3,
                          *, activation="tanh"):
    """
    sentences: (batch, seq) int32 token ids
    emb_table: (vocab, embedding_dim)
    w1, b1   : RNN linear1  (hidden, emb), (hidden,)
    w2, b2   : RNN linear2  (hidden, hidden), (hidden,)
    w3, b3   : output layer (tagset, hidden), (tagset,)
    returns  : (batch, seq, tagset) f32  == TaggingModel.forward(sentences)
    """
    batch, seq = sentences.shape
    emb = emb_table.shape[1]
    hidden = w1.shape[0]
    tagset = w3.shape[0]

    chunk = _pick_chunk(hidden)
    seq_p = _round_up(seq, chunk)
    batch_p = _round_up(batch, 8)                 # fill f32 sublanes
    # Two batch shards when possible so v7x's second TensorCore gets independent work.
    batch_shard = batch_p // 2 if (batch_p % 16 == 0) else batch_p

    # Pad token ids (id 0 is a valid row; padded rows/steps are sliced off below).
    sent_p = jnp.zeros((batch_p, seq_p), dtype=sentences.dtype)
    sent_p = sent_p.at[:batch, :seq].set(sentences)

    # Embedding gather, emitted directly in time-major layout (no activation-tensor
    # transpose; only the tiny id matrix is transposed).
    # TODO(synk): nn.Embedding row gather kept as jnp.take glue; a per-token Pallas
    # gather would pay ~0.35us of grid-step overhead per token.
    embeds_tm = jnp.take(emb_table, jnp.transpose(sent_p, (1, 0)), axis=0)

    # Hoisted input projection: one big MXU matmul with b1 + b2 folded in once.
    xproj = linear_pallas(embeds_tm.reshape(seq_p * batch_p, emb), w1, b1 + b2)
    xproj_tm = xproj.reshape(seq_p, batch_p, hidden)

    # Recurrence: per step, only h @ W2^T + xproj_t -> activation.
    out_chunks = rnn_recurrence_pallas(
        xproj_tm, w2, chunk=chunk, batch_shard=batch_shard, activation=activation)

    # Unpack the lane-dense chunk slabs back to (batch, seq, hidden).
    rnn_out = (
        out_chunks.reshape(seq_p // chunk, batch_p, chunk, hidden)
        .transpose(1, 0, 2, 3)
        .reshape(batch_p, seq_p, hidden)[:batch, :seq]
    )

    # Output layer over all (batch*seq) hidden states in one matmul.
    tags = linear_pallas(rnn_out.reshape(batch * seq, hidden), w3, b3)
    return tags.reshape(batch, seq, tagset)


# ---------------------------------------------------------------------------
# Pure-JAX reference (mirrors the PyTorch module) + parameter init.
# ---------------------------------------------------------------------------
def init_linear(key, in_features, out_features):
    kw, kb = jax.random.split(key)
    bound = 1.0 / math.sqrt(in_features)
    w = jax.random.uniform(kw, (out_features, in_features), jnp.float32, -bound, bound)
    b = jax.random.uniform(kb, (out_features,), jnp.float32, -bound, bound)
    return w, b


def tagging_model_reference(sentences, emb_table, w1, b1, w2, b2, w3, b3,
                            *, activation="tanh"):
    embeds = emb_table[sentences]                       # (batch, seq, emb)
    batch, seq, _ = embeds.shape
    hidden = w1.shape[0]
    act = jnp.tanh if activation == "tanh" else (lambda z: jnp.maximum(z, 0.0))
    h = jnp.zeros((batch, hidden), jnp.float32)
    outs = []
    for i in range(seq):
        h = act(embeds[:, i, :] @ w1.T + b1 + h @ w2.T + b2)
        outs.append(h)
    rnn_out = jnp.stack(outs, axis=1)                   # (batch, seq, hidden)
    tags = rnn_out.reshape(-1, hidden) @ w3.T + b3
    return tags.reshape(batch, seq, -1)


if __name__ == "__main__":
    vocab_size, tagset_size = 30, 10
    embedding_dim, hidden_dim = 16, 32
    batch, seq = 2, 8

    key = jax.random.PRNGKey(0)
    k_sent, k_emb, k1, k2, k3 = jax.random.split(key, 5)

    sentences = jax.random.randint(k_sent, (batch, seq), 0, vocab_size, dtype=jnp.int32)
    emb_table = jax.random.normal(k_emb, (vocab_size, embedding_dim), jnp.float32)
    w1, b1 = init_linear(k1, embedding_dim, hidden_dim)
    w2, b2 = init_linear(k2, hidden_dim, hidden_dim)
    w3, b3 = init_linear(k3, hidden_dim, tagset_size)

    fwd = jax.jit(functools.partial(tagging_model_forward, activation="tanh"))
    out = jax.block_until_ready(fwd(sentences, emb_table, w1, b1, w2, b2, w3, b3))

    ref = tagging_model_reference(sentences, emb_table, w1, b1, w2, b2, w3, b3,
                                  activation="tanh")
    assert out.shape == (batch, seq, tagset_size)
    assert jnp.allclose(out, ref, atol=2e-5, rtol=2e-5), \
        f"max abs err = {float(jnp.max(jnp.abs(out - ref)))}"
    print("KERNEL_OK")
</pallas_src>

<mosaic_0001>
module attributes {stable_mosaic.version = 11 : i64} {
  func.func @_linear_kernel(%arg0: i32, %arg1: memref<64x16xf32, #tpu.memory_space<vmem>>, %arg2: memref<16x32xf32, #tpu.memory_space<vmem>>, %arg3: memref<1x32xf32, #tpu.memory_space<vmem>>, %arg4: memref<64x32xf32, #tpu.memory_space<vmem>>) attributes {dimension_semantics = [#tpu.dimension_semantics<parallel>], iteration_bounds = array<i64: 1>, scalar_prefetch = 0 : i64, scratch_operands = 0 : i64, tpu.core_type = #tpu.core_type<tc>, window_params = [{transform_indices = @transform_0, window_bounds = array<i64: 64, 16>}, {pipeline_mode = #tpu.pipeline_mode<synchronous>, transform_indices = @transform_1, window_bounds = array<i64: 16, 32>}, {pipeline_mode = #tpu.pipeline_mode<synchronous>, transform_indices = @transform_2, window_bounds = array<i64: 1, 32>}, {transform_indices = @transform_3, window_bounds = array<i64: 64, 32>}]} {
    %c0 = arith.constant 0 : index
    %c0_0 = arith.constant 0 : index
    %0 = vector.load %arg1[%c0, %c0_0] : memref<64x16xf32, #tpu.memory_space<vmem>>, vector<64x16xf32>
    %c0_1 = arith.constant 0 : index
    %c0_2 = arith.constant 0 : index
    %1 = vector.load %arg2[%c0_1, %c0_2] : memref<16x32xf32, #tpu.memory_space<vmem>>, vector<16x32xf32>
    %cst = arith.constant dense<0.000000e+00> : vector<64x32xf32>
    %2 = tpu.matmul %0, %1, %cst {dimension_numbers = #tpu.dot_dimension_numbers<[1], [0], [0], [1], [0, 0, 1, 1], [], []>} : vector<64x16xf32>, vector<16x32xf32>, vector<64x32xf32> -> vector<64x32xf32>
    %c0_3 = arith.constant 0 : index
    %c0_4 = arith.constant 0 : index
    %3 = vector.load %arg3[%c0_3, %c0_4] : memref<1x32xf32, #tpu.memory_space<vmem>>, vector<1x32xf32>
    %4 = vector.broadcast %3 : vector<1x32xf32> to vector<64x32xf32>
    %5 = arith.addf %2, %4 : vector<64x32xf32>
    %c0_5 = arith.constant 0 : index
    %c0_6 = arith.constant 0 : index
    %6 = vector.load %arg4[%c0_5, %c0_6] : memref<64x32xf32, #tpu.memory_space<vmem>>, vector<64x32xf32>
    tpu.vector_store %arg4[%c0_5, %c0_6], %5 {strides = array<i32>} : memref<64x32xf32, #tpu.memory_space<vmem>>, vector<64x32xf32>,
    return
  }
  func.func @transform_0(%arg0: i32) -> (i32, i32) {
    %c0_i32 = arith.constant 0 : i32
    %c0_i32_0 = arith.constant 0 : i32
    return %arg0, %c0_i32 : i32, i32
  }
  func.func @transform_1(%arg0: i32) -> (i32, i32) {
    %c0_i32 = arith.constant 0 : i32
    %c0_i32_0 = arith.constant 0 : i32
    %c0_i32_1 = arith.constant 0 : i32
    return %c0_i32, %c0_i32_0 : i32, i32
  }
  func.func @transform_2(%arg0: i32) -> (i32, i32) {
    %c0_i32 = arith.constant 0 : i32
    %c0_i32_0 = arith.constant 0 : i32
    %c0_i32_1 = arith.constant 0 : i32
    return %c0_i32, %c0_i32_0 : i32, i32
  }
  func.func @transform_3(%arg0: i32) -> (i32, i32) {
    %c0_i32 = arith.constant 0 : i32
    %c0_i32_0 = arith.constant 0 : i32
    return %arg0, %c0_i32 : i32, i32
  }
}

module attributes {stable_mosaic.version = 11 : i64} {
  func.func @_rnn_chunk_kernel(%arg0: i32, %arg1: i32, %arg2: memref<4x8x32xf32, #tpu.memory_space<vmem>>, %arg3: memref<32x32xf32, #tpu.memory_space<vmem>>, %arg4: memref<1x8x128xf32, #tpu.memory_space<vmem>>, %arg5: memref<8x32xf32, #tpu.memory_space<vmem>>) attributes {dimension_semantics = [#tpu.dimension_semantics<parallel>, #tpu.dimension_semantics<arbitrary>], iteration_bounds = array<i64: 1, 2>, scalar_prefetch = 0 : i64, scratch_operands = 1 : i64, tpu.core_type = #tpu.core_type<tc>, window_params = [{transform_indices = @transform_0, window_bounds = array<i64: 4, 8, 32>}, {pipeline_mode = #tpu.pipeline_mode<synchronous>, transform_indices = @transform_1, window_bounds = array<i64: 32, 32>}, {transform_indices = @transform_2, window_bounds = array<i64: 1, 8, 128>}]} {
    %c0_i32 = arith.constant 0 : i32
    %0 = arith.cmpi eq, %arg1, %c0_i32 : i32
    %1 = arith.extui %0 : i1 to i32
    %c0_i32_0 = arith.constant 0 : i32
    %2 = arith.cmpi ne, %1, %c0_i32_0 : i32
    scf.if %2 {
      %cst_27 = arith.constant 0.000000e+00 : f32
      %38 = vector.broadcast %cst_27 : f32 to vector<8x32xf32>
      %c0_28 = arith.constant 0 : index
      %c0_29 = arith.constant 0 : index
      %39 = vector.load %arg5[%c0_28, %c0_29] : memref<8x32xf32, #tpu.memory_space<vmem>>, vector<8x32xf32>
      tpu.vector_store %arg5[%c0_28, %c0_29], %38 {strides = array<i32>} : memref<8x32xf32, #tpu.memory_space<vmem>>, vector<8x32xf32>,
    } else {
    }
    %c0 = arith.constant 0 : index
    %c0_1 = arith.constant 0 : index
    %3 = vector.load %arg3[%c0, %c0_1] : memref<32x32xf32, #tpu.memory_space<vmem>>, vector<32x32xf32>
    %c0_2 = arith.constant 0 : index
    %c0_3 = arith.constant 0 : index
    %4 = vector.load %arg5[%c0_2, %c0_3] : memref<8x32xf32, #tpu.memory_space<vmem>>, vector<8x32xf32>
    %c0_4 = arith.constant 0 : index
    %c0_5 = arith.constant 0 : index
    %c0_6 = arith.constant 0 : index
    %5 = vector.load %arg2[%c0_4, %c0_5, %c0_6] : memref<4x8x32xf32, #tpu.memory_space<vmem>>, vector<1x8x32xf32>
    %6 = vector.shape_cast %5 : vector<1x8x32xf32> to vector<8x32xf32>
    %cst = arith.constant dense<0.000000e+00> : vector<8x32xf32>
    %7 = tpu.matmul %4, %3, %cst {dimension_numbers = #tpu.dot_dimension_numbers<[1], [0], [0], [1], [0, 0, 1, 1], [], []>} : vector<8x32xf32>, vector<32x32xf32>, vector<8x32xf32> -> vector<8x32xf32>
    %8 = arith.addf %6, %7 : vector<8x32xf32>
    %9 = math.tanh %8 : vector<8x32xf32>
    %c0_7 = arith.constant 0 : index
    %c0_8 = arith.constant 0 : index
    %c0_9 = arith.constant 0 : index
    %10 = vector.load %arg4[%c0_7, %c0_8, %c0_9] : memref<1x8x128xf32, #tpu.memory_space<vmem>>, vector<1x8x32xf32>
    %11 = vector.shape_cast %10 : vector<1x8x32xf32> to vector<8x32xf32>
    %12 = vector.shape_cast %9 : vector<8x32xf32> to vector<1x8x32xf32>
    tpu.vector_store %arg4[%c0_7, %c0_8, %c0_9], %12 {strides = array<i32>} : memref<1x8x128xf32, #tpu.memory_space<vmem>>, vector<1x8x32xf32>,
    %c1 = arith.constant 1 : index
    %c0_10 = arith.constant 0 : index
    %c0_11 = arith.constant 0 : index
    %13 = vector.load %arg2[%c1, %c0_10, %c0_11] : memref<4x8x32xf32, #tpu.memory_space<vmem>>, vector<1x8x32xf32>
    %14 = vector.shape_cast %13 : vector<1x8x32xf32> to vector<8x32xf32>
    %cst_12 = arith.constant dense<0.000000e+00> : vector<8x32xf32>
    %15 = tpu.matmul %9, %3, %cst_12 {dimension_numbers = #tpu.dot_dimension_numbers<[1], [0], [0], [1], [0, 0, 1, 1], [], []>} : vector<8x32xf32>, vector<32x32xf32>, vector<8x32xf32> -> vector<8x32xf32>
    %16 = arith.addf %14, %15 : vector<8x32xf32>
    %17 = math.tanh %16 : vector<8x32xf32>
    %c0_13 = arith.constant 0 : index
    %c0_14 = arith.constant 0 : index
    %c32 = arith.constant 32 : index
    %18 = vector.load %arg4[%c0_13, %c0_14, %c32] : memref<1x8x128xf32, #tpu.memory_space<vmem>>, vector<1x8x32xf32>
    %19 = vector.shape_cast %18 : vector<1x8x32xf32> to vector<8x32xf32>
    %20 = vector.shape_cast %17 : vector<8x32xf32> to vector<1x8x32xf32>
    tpu.vector_store %arg4[%c0_13, %c0_14, %c32], %20 {strides = array<i32>} : memref<1x8x128xf32, #tpu.memory_space<vmem>>, vector<1x8x32xf32>,
    %c2 = arith.constant 2 : index
    %c0_15 = arith.constant 0 : index
    %c0_16 = arith.constant 0 : index
    %21 = vector.load %arg2[%c2, %c0_15, %c0_16] : memref<4x8x32xf32, #tpu.memory_space<vmem>>, vector<1x8x32xf32>
    %22 = vector.shape_cast %21 : vector<1x8x32xf32> to vector<8x32xf32>
    %cst_17 = arith.constant dense<0.000000e+00> : vector<8x32xf32>
    %23 = tpu.matmul %17, %3, %cst_17 {dimension_numbers = #tpu.dot_dimension_numbers<[1], [0], [0], [1], [0, 0, 1, 1], [], []>} : vector<8x32xf32>, vector<32x32xf32>, vector<8x32xf32> -> vector<8x32xf32>
    %24 = arith.addf %22, %23 : vector<8x32xf32>
    %25 = math.tanh %24 : vector<8x32xf32>
    %c0_18 = arith.constant 0 : index
    %c0_19 = arith.constant 0 : index
    %c64 = arith.constant 64 : index
    %26 = vector.load %arg4[%c0_18, %c0_19, %c64] : memref<1x8x128xf32, #tpu.memory_space<vmem>>, vector<1x8x32xf32>
    %27 = vector.shape_cast %26 : vector<1x8x32xf32> to vector<8x32xf32>
    %28 = vector.shape_cast %25 : vector<8x32xf32> to vector<1x8x32xf32>
    tpu.vector_store %arg4[%c0_18, %c0_19, %c64], %28 {strides = array<i32>} : memref<1x8x128xf32, #tpu.memory_space<vmem>>, vector<1x8x32xf32>,
    %c3 = arith.constant 3 : index
    %c0_20 = arith.constant 0 : index
    %c0_21 = arith.constant 0 : index
    %29 = vector.load %arg2[%c3, %c0_20, %c0_21] : memref<4x8x32xf32, #tpu.memory_space<vmem>>, vector<1x8x32xf32>
    %30 = vector.shape_cast %29 : vector<1x8x32xf32> to vector<8x32xf32>
    %cst_22 = arith.constant dense<0.000000e+00> : vector<8x32xf32>
    %31 = tpu.matmul %25, %3, %cst_22 {dimension_numbers = #tpu.dot_dimension_numbers<[1], [0], [0], [1], [0, 0, 1, 1], [], []>} : vector<8x32xf32>, vector<32x32xf32>, vector<8x32xf32> -> vector<8x32xf32>
    %32 = arith.addf %30, %31 : vector<8x32xf32>
    %33 = math.tanh %32 : vector<8x32xf32>
    %c0_23 = arith.constant 0 : index
    %c0_24 = arith.constant 0 : index
    %c96 = arith.constant 96 : index
    %34 = vector.load %arg4[%c0_23, %c0_24, %c96] : memref<1x8x128xf32, #tpu.memory_space<vmem>>, vector<1x8x32xf32>
    %35 = vector.shape_cast %34 : vector<1x8x32xf32> to vector<8x32xf32>
    %36 = vector.shape_cast %33 : vector<8x32xf32> to vector<1x8x32xf32>
    tpu.vector_store %arg4[%c0_23, %c0_24, %c96], %36 {strides = array<i32>} : memref<1x8x128xf32, #tpu.memory_space<vmem>>, vector<1x8x32xf32>,
    %c0_25 = arith.constant 0 : index
    %c0_26 = arith.constant 0 : index
    %37 = vector.load %arg5[%c0_25, %c0_26] : memref<8x32xf32, #tpu.memory_space<vmem>>, vector<8x32xf32>
    tpu.vector_store %arg5[%c0_25, %c0_26], %33 {strides = array<i32>} : memref<8x32xf32, #tpu.memory_space<vmem>>, vector<8x32xf32>,
    return
  }
  func.func @transform_0(%arg0: i32, %arg1: i32) -> (i32, i32, i32) {
    %c0_i32 = arith.constant 0 : i32
    %c0_i32_0 = arith.constant 0 : i32
    return %arg1, %arg0, %c0_i32 : i32, i32, i32
  }
  func.func @transform_1(%arg0: i32, %arg1: i32) -> (i32, i32) {
    %c0_i32 = arith.constant 0 : i32
    %c0_i32_0 = arith.constant 0 : i32
    %c0_i32_1 = arith.constant 0 : i32
    return %c0_i32, %c0_i32_0 : i32, i32
  }
  func.func @transform_2(%arg0: i32, %arg1: i32) -> (i32, i32, i32) {
    %c0_i32 = arith.constant 0 : i32
    %c0_i32_0 = arith.constant 0 : i32
    return %arg1, %arg0, %c0_i32 : i32, i32, i32
  }
}

module attributes {stable_mosaic.version = 11 : i64} {
  func.func @_linear_kernel(%arg0: i32, %arg1: memref<16x32xf32, #tpu.memory_space<vmem>>, %arg2: memref<32x10xf32, #tpu.memory_space<vmem>>, %arg3: memref<1x10xf32, #tpu.memory_space<vmem>>, %arg4: memref<16x10xf32, #tpu.memory_space<vmem>>) attributes {dimension_semantics = [#tpu.dimension_semantics<parallel>], iteration_bounds = array<i64: 1>, scalar_prefetch = 0 : i64, scratch_operands = 0 : i64, tpu.core_type = #tpu.core_type<tc>, window_params = [{transform_indices = @transform_0, window_bounds = array<i64: 16, 32>}, {pipeline_mode = #tpu.pipeline_mode<synchronous>, transform_indices = @transform_1, window_bounds = array<i64: 32, 10>}, {pipeline_mode = #tpu.pipeline_mode<synchronous>, transform_indices = @transform_2, window_bounds = array<i64: 1, 10>}, {transform_indices = @transform_3, window_bounds = array<i64: 16, 10>}]} {
    %c0 = arith.constant 0 : index
    %c0_0 = arith.constant 0 : index
    %0 = vector.load %arg1[%c0, %c0_0] : memref<16x32xf32, #tpu.memory_space<vmem>>, vector<16x32xf32>
    %c0_1 = arith.constant 0 : index
    %c0_2 = arith.constant 0 : index
    %1 = vector.load %arg2[%c0_1, %c0_2] : memref<32x10xf32, #tpu.memory_space<vmem>>, vector<32x10xf32>
    %cst = arith.constant dense<0.000000e+00> : vector<16x10xf32>
    %2 = tpu.matmul %0, %1, %cst {dimension_numbers = #tpu.dot_dimension_numbers<[1], [0], [0], [1], [0, 0, 1, 1], [], []>} : vector<16x32xf32>, vector<32x10xf32>, vector<16x10xf32> -> vector<16x10xf32>
    %c0_3 = arith.constant 0 : index
    %c0_4 = arith.constant 0 : index
    %3 = vector.load %arg3[%c0_3, %c0_4] : memref<1x10xf32, #tpu.memory_space<vmem>>, vector<1x10xf32>
    %4 = vector.broadcast %3 : vector<1x10xf32> to vector<16x10xf32>
    %5 = arith.addf %2, %4 : vector<16x10xf32>
    %c0_5 = arith.constant 0 : index
    %c0_6 = arith.constant 0 : index
    %6 = vector.load %arg4[%c0_5, %c0_6] : memref<16x10xf32, #tpu.memory_space<vmem>>, vector<16x10xf32>
    tpu.vector_store %arg4[%c0_5, %c0_6], %5 {strides = array<i32>} : memref<16x10xf32, #tpu.memory_space<vmem>>, vector<16x10xf32>,
    return
  }
  func.func @transform_0(%arg0: i32) -> (i32, i32) {
    %c0_i32 = arith.constant 0 : i32
    %c0_i32_0 = arith.constant 0 : i32
    return %arg0, %c0_i32 : i32, i32
  }
  func.func @transform_1(%arg0: i32) -> (i32, i32) {
    %c0_i32 = arith.constant 0 : i32
    %c0_i32_0 = arith.constant 0 : i32
    %c0_i32_1 = arith.constant 0 : i32
    return %c0_i32, %c0_i32_0 : i32, i32
  }
  func.func @transform_2(%arg0: i32) -> (i32, i32) {
    %c0_i32 = arith.constant 0 : i32
    %c0_i32_0 = arith.constant 0 : i32
    %c0_i32_1 = arith.constant 0 : i32
    return %c0_i32, %c0_i32_0 : i32, i32
  }
  func.func @transform_3(%arg0: i32) -> (i32, i32) {
    %c0_i32 = arith.constant 0 : i32
    %c0_i32_0 = arith.constant 0 : i32
    return %arg0, %c0_i32 : i32, i32
  }
}

</mosaic_0001>

<bundles_post_ra>
// kernel: tagging_model_forward.3
= control target key start
LH: loop header
LB: loop body
LE: loop exit
PB: predicated region body
PF: predicated region fallthrough
CT: control target
= control target key end

     0   :  { %vm31_vm0 = vcmask 130048   ;;  %vm161_vm1 = vcmask 261120   ;;  %s308_s1 = inlined_call_operand.vmem [shape: f32[16,32], index: 1, kind: input, shape index: {}]   ;;  %s309_s0 = inlined_call_operand.vmem [shape: f32[64,16], index: 0, kind: input, shape index: {}]   ;;  %s310_s2 = inlined_call_operand.vmem [shape: f32[1,32], index: 2, kind: input, shape index: {}]   ;;  %s311_s3 = inlined_call_operand.vmem [shape: f32[64,32], index: 3, kind: output, shape index: {}]  }
   0x1   :  { %v22_v0 = vld [vmem:[%s308_s1] sm:$0xff]  ;;  %v23_v1 = vld [vmem:[%s308_s1 + $0x8] sm:$0xff]  ;;  %v16_v7 = vld [vmem:[%s309_s0 + $0x10] sm:$0xff] }
   0x2   :  { %v14_v2 = vld [vmem:[%s309_s0] sm:$0xff]  ;;  %v209_v3 = vpack.c.bf16 %v23_v1, %v22_v0  ;;  %v15_v5 = vld [vmem:[%s309_s0 + $0x8] sm:$0xff]  ;;  %v20_v8 = vld [vmem:[%s309_s0 + $0x30] sm:$0xff] }
   0x3   :  { %197 = vmatprep.mubr.msk.f32.mxu0 %vm31_vm0, %v14_v2  ;;  %v18_v4 = vld [vmem:[%s309_s0 + $0x20] sm:$0xff]  ;;  %v19_v6 = vld [vmem:[%s309_s0 + $0x28] sm:$0xff]  ;;  %v17_v9 = vld [vmem:[%s309_s0 + $0x18] sm:$0xff] }
   0x4   :  { %203 = vmatprep.mubr.msk.f32.mxu1 %vm31_vm0, %v18_v4  ;;  %210 = vmatprep.subr.bf16.mxu0 %v209_v3  ;;  %v21_v10 = vld [vmem:[%s309_s0 + $0x38] sm:$0xff]  ;;  %v174_v11 = vld [vmem:[%s310_s2] ss:$0 sm:$0xff] }
   0x5   :  { %213 = vmatprep.subr.bf16.mxu1 %v209_v3  ;;  %212 = vmatpush3.bf16.msra.mxu0 %v209_v3 }
   0x6   :  { %214 = vmatpush3.bf16.msra.mxu1 %v209_v3 }
   0x8   :  { %198 = vmatmul.mubr.msk.f32.vlgmr.msra.gmra.mrb[0].mxu0 %vm31_vm0, %v15_v5 }
   0x9   :  { %204 = vmatmul.mubr.msk.f32.vlgmr.msra.gmra.mrb[0].mxu1 %vm31_vm0, %v19_v6  ;;  %200 = vmatprep.mubr.msk.f32.mxu0 %vm31_vm0, %v16_v7 }
   0xa   :  { %206 = vmatprep.mubr.msk.f32.mxu1 %vm31_vm0, %v20_v8 }
   0xc   :  { %201 = vmatmul.mubr.msk.f32.gmra.mrb[2].mxu0 %vm31_vm0, %v17_v9 }
   0xd   :  { %207 = vmatmul.mubr.msk.f32.gmra.mrb[2].mxu1 %vm31_vm0, %v21_v10 }
  0xdb   :  { %v199_v12 = vpop.f32.mrb[0].mxu0 }
  0xdc   :  { %v205_v13 = vpop.f32.mrb[0].mxu1  ;;  %v128_v14 = vadd.f32 %v199_v12, %v174_v11  ;;  %v122_v16 = vpop.f32.mrb[1].mxu0 }
  0xdd   :  { %v148_v15 = vadd.f32 %v205_v13, %v174_v11  ;;  %v142_v17 = vpop.f32.mrb[1].mxu1  ;;  %v123_v18 = vadd.f32 %v174_v11, %v122_v16 }
  0xde   :  { %v143_v19 = vadd.f32 %v174_v11, %v142_v17  ;;  %163 = vst.msk [vmem:[%s311_s3 + $0x8] sm:$0xff] %vm161_vm1, %v128_v14 }
  0xdf   :  { %167 = vst.msk [vmem:[%s311_s3 + $0x28] sm:$0xff] %vm161_vm1, %v148_v15  ;;  %162 = vst.msk [vmem:[%s311_s3] sm:$0xff] %vm161_vm1, %v123_v18  ;;  %v202_v20 = vpop.f32.mrb[2].mxu0 }
  0xe0   :  { %166 = vst.msk [vmem:[%s311_s3 + $0x20] sm:$0xff] %vm161_vm1, %v143_v19  ;;  %v208_v21 = vpop.f32.mrb[2].mxu1  ;;  %v138_v22 = vadd.f32 %v202_v20, %v174_v11  ;;  %v132_v24 = vpop.f32.mrb[3].mxu0 }
  0xe1   :  { %v158_v23 = vadd.f32 %v208_v21, %v174_v11  ;;  %v152_v25 = vpop.f32.mrb[3].mxu1  ;;  %v133_v26 = vadd.f32 %v174_v11, %v132_v24 }
  0xe2   :  { %v153_v27 = vadd.f32 %v174_v11, %v152_v25  ;;  %165 = vst.msk [vmem:[%s311_s3 + $0x18] sm:$0xff] %vm161_vm1, %v138_v22 }
  0xe3   :  { %169 = vst.msk [vmem:[%s311_s3 + $0x38] sm:$0xff] %vm161_vm1, %v158_v23  ;;  %164 = vst.msk [vmem:[%s311_s3 + $0x10] sm:$0xff] %vm161_vm1, %v133_v26 }
  0xe4   :  { %168 = vst.msk [vmem:[%s311_s3 + $0x30] sm:$0xff] %vm161_vm1, %v153_v27 }

// kernel: tagging_model_forward.5
= control target key start
LH: loop header
LB: loop body
LE: loop exit
PB: predicated region body
PF: predicated region fallthrough
CT: control target
= control target key end

     0   :  { %vm28_vm0 = vcmask 261120   ;;  %s240_s0 = inlined_call_operand.vmem [shape: f32[16,32], index: 0, kind: input, shape index: {}]   ;;  %s241_s1 = inlined_call_operand.vmem [shape: f32[32,10], index: 1, kind: input, shape index: {}]   ;;  %s242_s2 = inlined_call_operand.vmem [shape: f32[1,10], index: 2, kind: input, shape index: {}]   ;;  %s243_s3 = inlined_call_operand.hbm [shape: f32[16,10], index: 3, kind: output, shape index: {}]  }
   0x1   :  { %v17_v0 = vld [vmem:[%s241_s1] sm:$0xff]  ;;  %v18_v1 = vld [vmem:[%s241_s1 + $0x8] sm:$0xff]  ;;  %v19_v2 = vld [vmem:[%s241_s1 + $0x10] sm:$0xff] }
   0x2   :  { %v149_v3 = vpack.c.bf16 %v18_v1, %v17_v0  ;;  %v20_v4 = vld [vmem:[%s241_s1 + $0x18] sm:$0xff]  ;;  %v15_v5 = vld [vmem:[%s240_s0] sm:$0xff] }
   0x3   :  { %v153_v6 = vpack.c.bf16 %v20_v4, %v19_v2  ;;  %146 = vmatprep.mubr.msk.f32.mxu0 %vm28_vm0, %v15_v5 }
   0x4   :  { %8 = vsyncpa [#allocation3], 0  ;;  %150 = vmatprep.subr.bf16.mxu0 %v149_v3  ;;  %v16_v7 = vld [vmem:[%s240_s0 + $0x8] sm:$0xff]  ;;  %v129_v8 = vld [vmem:[%s242_s2] ss:$0 sm:$0xff]  ;;  %s184_s1 = smov [#allocation2]  }
   0x5   :  { %152 = vmatpush3.bf16.msra.mxu0 %v149_v3  ;;  %s118_s26 = sshll.u32 %s184_s1, 4  ;;  %vm110_vm1 = vcmask 80896   ;;  %s119_s26 = int_to_ptr.vmem [resolvable:$true] %s118_s26 }
   0x6   :  { %154 = vmatprep.subr.bf16.mxu0 %v153_v6  ;;  %s160_s27 = scalar_lea.vmem %s119_s26, 256  ;;  %p165_p1 = scmp.lt.s32.totalorder %s119_s26, %s119_s26 }
   0x7   :  { %p161_p0 = scmp.ne.s32.totalorder %s119_s26, %s160_s27  ;;  %p166_p2 = scmp.lt.s32.totalorder %s160_s27, %s160_s27 }
   0x9   :  { %156 = vmatpush3.bf16.msra.mxu0 %v153_v6  ;;  %p167_p3 = por %p166_p2, %p165_p1 }
   0xb   :  { %p168_p4 = pnand %p167_p3, %p161_p0 }
   0xc   :  { %147 = vmatmul.mubr.msk.f32.vlgmr.msra.gmra.mrb[0].mxu0 %vm28_vm0, %v16_v7 }
  0xdf   :  { %v148_v9 = vpop.f32.mrb[0].mxu0 }
  0xe0   :  { %v107_v10 = vadd.f32 %v148_v9, %v129_v8  ;;  %v101_v11 = vpop.f32.mrb[1].mxu0 }
  0xe1   :  { %v102_v12 = vadd.f32 %v129_v8, %v101_v11 }
  0xe2   :  { %112 = vst.msk [vmem:[#allocation2 + $0x8] sm:$0xff] %vm110_vm1, %v107_v10 }
  0xe3   :  { %111 = vst.msk [vmem:[#allocation2] sm:$0xff] %vm110_vm1, %v102_v12 }
  0xe4   :  { %171 = shalt.err (!%p168_p4)
}
  0xe5   :  { %s172_s2 = scalar_lea.hbm %s243_s3, 256 }
  0xe6   :  { %p173_p5 = scmp.ne.s32.totalorder %s243_s3, %s172_s2  ;;  %p176_p6 = scmp.lt.u32.totalorder %s172_s2, %s243_s3 }
  0xe8   :  { %p178_p7 = pnand %p176_p6, %p173_p5 }
  0xea   :  { %181 = shalt.err (!%p178_p7)
}
  0xeb   :  { %s185_s6 = smov 128   ;;  %s186_s7 = smov 8  }
  0xec   :  { %124 = dma.vmem_to_hbm [thread:$0]  %s119_s26, 256, %s243_s3, [#allocation3], %s185_s6, %s185_s6, %s186_s7  }
  0xed   :  { %182 = dma.done.wait [#allocation3], 256  }
  0xee   :  { %183 = vsyncadd [#allocation3], 4294967040 }
  0xef   :  { %128 = vsyncpa [#allocation3], 1 }

// kernel: tagging_model_forward.4
= control target key start
LH: loop header
LB: loop body
LE: loop exit
PB: predicated region body
PF: predicated region fallthrough
CT: control target
= control target key end

     0   :  { %s777_s9 = smov 0   ;;  %s779_s10 = smov 0   ;;  %s844_s0 = inlined_call_operand.vmem [shape: f32[8,8,32], index: 0, kind: input, shape index: {}]   ;;  %s845_s1 = inlined_call_operand.vmem [shape: f32[32,32], index: 1, kind: input, shape index: {}]   ;;  %s846_s2 = inlined_call_operand.vmem [shape: f32[2,8,128], index: 2, kind: output, shape index: {}]  }
   0x1   :  { %s781_s11 = smov 0  }
   0x2 LB: > { %s21_s12 = sadd.s32 1, %s749_s10  ;;  %p590_p0 = scmp.ge.s32.totalorder %s753_s11, 1  ;;  %s753_s11 = sphi %s781_s11, %s12_s11   ;;  %s749_s10 = sphi %s779_s10, %s848_s10   ;;  %s745_s9 = sphi %s777_s9, %s847_s9  }
   0x3   : > { %p22_p1 = scmp.ge.s32.totalorder %s21_s12, 2  ;;  %p132_p2 = scmp.lt.s32.totalorder %s753_s11, 3 }
   0x5   : > { %s850_s12 = smov (%p22_p1, %s21_s12), 0  ;;  %p133_p3 = pnand %p590_p0, %p132_p2 }
   0x6   : > { %s591_s13 = sshll.u32 (!%p133_p3), %s745_s9, 2  ;;  %p168_p4 = scmp.lt.s32.totalorder (!%p133_p3), %s745_s9, 1 }
   0x7   : > { %136 = sbr.rel (%p133_p3) target bundleno = 1048 (0x418), region = 28  ;;  %p160_p5 = scmp.lt.s32.totalorder (!%p133_p3), %s591_s13, 7 }
   0x8   : > { %p594_p6 = scmp.ne.s32.totalorder (!%p133_p3), %s745_s9, 0 }
   0xe   : > { %s169_s14 = scalar_select %p168_p4, %s745_s9, 1 }
   0xf   : > { %s852_s13 = smov (!%p160_p5, %s591_s13), 7  ;;  %178 = sbr.rel (%p594_p6) target bundleno = 22 (0x16), region = 32 }
  0x10   : > { %s593_s15 = sshll.u32 %s169_s14, 3  ;;  %s592_s16 = sshll.u32 %s852_s13, 3  ;;  %vm179_vm0 = vcmask (!%p594_p6), 261120   ;;  %v755_v0 = vmov (!%p594_p6), 0.0  }
  0x11   : > { %s798_s19 = scalar_lea.vmem %s846_s2, %s593_s15  ;;  %s803_s22 = scalar_lea.vmem %s844_s0, %s592_s16  ;;  %180 = vst.msk [vmem:[#allocation2] sm:$0xff] (!%p594_p6), %vm179_vm0, %v755_v0 }
  0x16 PF: > { %v181_v1 = vld [vmem:[%s845_s1] sm:$0xff]  ;;  %v182_v2 = vld [vmem:[%s845_s1 + $0x8] sm:$0xff]  ;;  %v183_v3 = vld [vmem:[%s845_s1 + $0x10] sm:$0xff]  ;;  %v756_v4 = vmov 0.0|0.0   ;;  %vm757_vm1 = vmmov 0   ;;  %v758_v7 = vmov 0.0  }
  0x17   : > { %668 = vmatprep.subr.bf16.mxu0 %v756_v4  ;;  %v669_v5 = vpack.c.bf16 %v182_v2, %v181_v1  ;;  %v184_v6 = vld [vmem:[%s845_s1 + $0x18] sm:$0xff]  ;;  %632 = vmatprep.mubr.msk.f32.mxu0 %vm757_vm1, %v758_v7  ;;  %vm187_vm2 = vcmask 261120   ;;  %v186_v10 = vld [vmem:[%s803_s22] sm:$0xff]  ;;  %v596_v15 = vld [vmem:[%s803_s22 + $0x8] sm:$0xff]  ;;  %s759_s3 = smov 32   ;;  %vm345_vm3 = vcmask 523520  }
  0x18   : > { %674 = vmatprep.subr.bf16.mxu1 %v756_v4  ;;  %643 = vmatprep.mubr.msk.f32.mxu1 %vm757_vm1, %v758_v7  ;;  %v672_v8 = vpack.c.bf16 %v184_v6, %v183_v3  ;;  %v185_v9 = vld [vmem:[#allocation2] sm:$0xff]  ;;  %v598_v21 = vld [vmem:[%s803_s22 + $0x10] sm:$0xff]  ;;  %s760_s4 = smov 64   ;;  %vm427_vm4 = vcmask 785920   ;;  %v600_v27 = vld [vmem:[%s803_s22 + $0x18] sm:$0xff]  ;;  %s761_s5 = smov 96  }
  0x19   : > { %670 = vmatpush3.bf16.msra.mxu0 %v669_v5  ;;  %676 = vmatpush3.bf16.msra.mxu1 %v669_v5  ;;  %vm509_vm5 = vcmask 1048320  }
  0x1a   : > { %671 = vmatprep.subr.bf16.mxu0 %v756_v4  ;;  %677 = vmatprep.subr.bf16.mxu1 %v756_v4 }
  0x1d   : > { %673 = vmatpush3.bf16.msra.mxu0 %v672_v8  ;;  %679 = vmatpush3.bf16.msra.mxu1 %v672_v8 }
  0x1e   : > { %680 = vmatprep.subr.bf16.mxu0 %v756_v4  ;;  %686 = vmatprep.subr.bf16.mxu1 %v756_v4 }
  0x20   : > { %633 = vmatmul.mubr.msk.f32.vlgmr.msra.gmra.mrb[0].mxu0 %vm187_vm2, %v185_v9 }
  0x21   : > { %682 = vmatpush3.bf16.msra.mxu0 %v669_v5  ;;  %654 = vmatprep.mubr.msk.f32.mxu0 %vm757_vm1, %v758_v7 }
  0x22   : > { %683 = vmatprep.subr.bf16.mxu0 %v756_v4 }
  0x25   : > { %685 = vmatpush3.bf16.msra.mxu0 %v672_v8 }
  0xf3   : > { %v257_v11 = vpop.f32.mrb[0].mxu0 }
  0xf4   : > { %v261_v12 = vadd.f32 %v257_v11, %v186_v10  ;;  %v634_v13 = vpop.f32.mrb[1].mxu0 }
  0xf6   : > { %723 = vtanh.f32 %v261_v12 }
 0x100   : > { %v724_v14 = vpop.eup %723 }
 0x101   : > { %263 = vst.msk [vmem:[%s798_s19] sm:$0xff] %vm187_vm2, %v724_v14  ;;  %644 = vmatmul.mubr.msk.f32.vlgmr.msra.gmra.mrb[0].mxu1 %vm187_vm2, %v724_v14 }
 0x102   : > { %688 = vmatpush3.bf16.msra.mxu1 %v669_v5  ;;  %665 = vmatprep.mubr.msk.f32.mxu1 %vm757_vm1, %v758_v7 }
 0x103   : > { %689 = vmatprep.subr.bf16.mxu1 %v756_v4 }
 0x106   : > { %691 = vmatpush3.bf16.msra.mxu1 %v672_v8 }
 0x1d4   : > { %v335_v16 = vpop.f32.mrb[0].mxu1 }
 0x1d5   : > { %v339_v17 = vadd.f32 %v596_v15, %v335_v16  ;;  %v645_v18 = vpop.f32.mrb[1].mxu1 }
 0x1d7   : > { %725 = vtanh.f32 %v339_v17 }
 0x1e1   : > { %v726_v19 = vpop.eup %725 }
 0x1e2   : > { %342 = vrot.lane.b32.xlu0 %v726_v19, %s759_s3  ;;  %655 = vmatmul.mubr.msk.f32.vlgmr.msra.gmra.mrb[2].mxu0 %vm187_vm2, %v726_v19 }
 0x254   : > { %v343_v20 = vpop.permute.xlu0 %342 }
 0x255   : > { %346 = vst.msk [vmem:[%s798_s19] sm:$0xff] %vm345_vm3, %v343_v20 }
 0x2b5   : > { %v417_v22 = vpop.f32.mrb[2].mxu0 }
 0x2b6   : > { %v421_v23 = vadd.f32 %v598_v21, %v417_v22  ;;  %v656_v24 = vpop.f32.mrb[3].mxu0 }
 0x2b8   : > { %727 = vtanh.f32 %v421_v23 }
 0x2c2   : > { %v728_v25 = vpop.eup %727 }
 0x2c3   : > { %424 = vrot.lane.b32.xlu0 %v728_v25, %s760_s4  ;;  %666 = vmatmul.mubr.msk.f32.vlgmr.msra.gmra.mrb[2].mxu1 %vm187_vm2, %v728_v25 }
 0x335   : > { %v425_v26 = vpop.permute.xlu0 %424 }
 0x336   : > { %428 = vst.msk [vmem:[%s798_s19] sm:$0xff] %vm427_vm4, %v425_v26 }
 0x396   : > { %v499_v28 = vpop.f32.mrb[2].mxu1 }
 0x397   : > { %v503_v29 = vadd.f32 %v600_v27, %v499_v28  ;;  %v667_v30 = vpop.f32.mrb[3].mxu1 }
 0x399   : > { %729 = vtanh.f32 %v503_v29 }
 0x3a3   : > { %v730_v31 = vpop.eup %729 }
 0x3a4   : > { %511 = vst.msk [vmem:[#allocation2] sm:$0xff] %vm187_vm2, %v730_v31  ;;  %506 = vrot.lane.b32.xlu1 %v730_v31, %s761_s5 }
 0x416   : > { %v507_v32 = vpop.permute.xlu1 %506 }
 0x417   : > { %510 = vst.msk [vmem:[%s798_s19] sm:$0xff] %vm509_vm5, %v507_v32 }
 0x418 PF: > { %s12_s11 = sadd.s32 1, %s753_s11   ;;  %s847_s9 = smov %s749_s10 }
 0x419   : > { %p9_p7 = scmp.ge.s32.totalorder %s12_s11, 4   ;;  %s848_s10 = smov %s850_s12 }
 0x41b   :  { %11 = sbr.rel (!%p9_p7) target bundleno = 2 (0x2), region = 65 }

</bundles_post_ra>
